<compile_context>
chip_gen: v7x
topology: tpu7x:2x2x1
jax: 0.10.0
libtpu: 0.0.40
codegen_flags: <defaults>
</compile_context>

<pallas_src>
import functools

import jax
import jax.numpy as jnp
from jax.experimental import pallas as pl
from jax.experimental.pallas import tpu as pltpu

LN_EPS = 1e-5   # PyTorch nn.LayerNorm default
LANE = 128
SUBLANE = 8


def _round_up(x, m):
    return (x + m - 1) // m * m


def _cdiv(a, b):
    return (a + b - 1) // b


@functools.cache
def _vmem_limit_bytes():
    """Generation-aware VMEM budget: ~0.8x physical capacity, v7x-safe fallback."""
    try:
        info = pltpu.get_tpu_info()
        cap = int(getattr(info, "vmem_capacity_bytes", 0) or 0)
        if cap > 0:
            return int(cap * 0.8)
    except Exception:
        pass
    return 48 * 1024 * 1024   # safe on v7x (64 MiB physical) if the query fails


@functools.cache
def _buffered_one_supported():
    """Probe once whether pipeline_mode=pl.Buffered(1) lowers on this jax/libtpu."""
    if not hasattr(pl, "Buffered"):
        return False

    def _copy(x_ref, o_ref):
        o_ref[...] = x_ref[...]

    try:
        x = jnp.zeros((SUBLANE, LANE), jnp.float32)
        fn = pl.pallas_call(
            _copy,
            out_shape=jax.ShapeDtypeStruct((SUBLANE, LANE), jnp.float32),
            grid=(1,),
            in_specs=[pl.BlockSpec((SUBLANE, LANE), lambda i: (0, 0),
                                   pipeline_mode=pl.Buffered(1))],
            out_specs=pl.BlockSpec((SUBLANE, LANE), lambda i: (0, 0)),
        )
        jax.block_until_ready(fn(x))
        return True
    except Exception:
        return False


def _const_spec(shape):
    """Full-array block, constant index_map -> stays VMEM-resident across steps.
    Single-buffered when supported (constant block index never changes)."""
    if _buffered_one_supported():
        return pl.BlockSpec(shape, lambda i: (0, 0), pipeline_mode=pl.Buffered(1))
    return pl.BlockSpec(shape, lambda i: (0, 0))


def _make_kernel(hid_true, out_true, hid_p, out_p, same_dim, use_layer_norm,
                 mxu_dtype):
    """Build the kernel body with static (Python) config baked in."""

    def layernorm(h, gamma, beta, n_true, n_pad):
        # Two-pass variance (subtract mean, then square) - numerically safer
        # than E[x^2]-E[x]^2.  Padded activation columns are exactly zero, so
        # the plain sum over the padded width gives the true-width sum; the
        # centered values are masked before squaring so padded columns do not
        # pollute the variance.  Padded gamma/beta are zero -> padded output 0.
        inv_n = 1.0 / float(n_true)
        mean = jnp.sum(h, axis=-1, keepdims=True) * inv_n
        centered = h - mean
        if n_true != n_pad:
            col = jax.lax.broadcasted_iota(jnp.int32, h.shape, h.ndim - 1)
            centered = jnp.where(col < n_true, centered, 0.0)
        var = jnp.sum(centered * centered, axis=-1, keepdims=True) * inv_n
        return centered * jax.lax.rsqrt(var + LN_EPS) * gamma + beta

    def kernel(*refs):
        it = iter(refs)
        x_ref = next(it)
        w1_ref = next(it)
        b1_ref = next(it)
        if use_layer_norm:
            g1_ref = next(it)
            be1_ref = next(it)
        w2_ref = next(it)
        b2_ref = next(it)
        if use_layer_norm:
            g2_ref = next(it)
            be2_ref = next(it)
        o_ref = next(it)

        x = x_ref[...]
        xm = x.astype(mxu_dtype)

        # Linear 1 (and, in the projection case, the skip projection fused into
        # the same RHS so xm goes through the MXU once).  f32 accumulation.
        h_all = jnp.dot(xm, w1_ref[...], preferred_element_type=jnp.float32)
        h_all = h_all + b1_ref[...]
        if same_dim:
            h = h_all
            ident = x.astype(jnp.float32)           # identity skip
        else:
            h = h_all[:, :hid_p]                    # lane-tile-aligned slices
            ident = h_all[:, hid_p:]                # projected skip (+bp fused)

        if use_layer_norm:
            h = layernorm(h, g1_ref[...], be1_ref[...], hid_true, hid_p)
        h = jnp.maximum(h, 0.0)                     # ReLU

        # Linear 2 (f32 accumulation)
        y = jnp.dot(h.astype(mxu_dtype), w2_ref[...],
                    preferred_element_type=jnp.float32)
        y = y + b2_ref[...]
        if use_layer_norm:
            y = layernorm(y, g2_ref[...], be2_ref[...], out_true, out_p)

        o_ref[...] = jnp.maximum(y + ident, 0.0).astype(o_ref.dtype)

    return kernel


def prepare_params(params, same_dim, use_layer_norm=True,
                   mxu_dtype=jnp.bfloat16):
    """Pad/cast the block parameters ONCE (outside the per-call jit).

    Weights are lane-padded to multiples of 128 and cast to `mxu_dtype`
    (default bf16: ~2-3x MXU throughput + half the resident VMEM; expect
    ~1e-2 abs error vs. f32 PyTorch - use jnp.float32 for tight accuracy).
    In the projection case w1 and wp are fused into a single MXU RHS.
    """
    f_in, hid = params["w1"].shape
    f_out = params["w2"].shape[1]
    f_in_p = _round_up(f_in, LANE)
    hid_p = _round_up(hid, LANE)
    f_out_p = _round_up(f_out, LANE)

    def pad2(a, rows, cols, dtype=jnp.float32):
        a = jnp.asarray(a, jnp.float32)
        a = jnp.pad(a, ((0, rows - a.shape[0]), (0, cols - a.shape[1])))
        return a.astype(dtype)

    arrays = {}
    if same_dim:
        arrays["w1"] = pad2(params["w1"], f_in_p, hid_p, mxu_dtype)
        arrays["b1"] = pad2(params["b1"], 1, hid_p)
    else:
        w1 = pad2(params["w1"], f_in_p, hid_p, mxu_dtype)
        wp = pad2(params["wp"], f_in_p, f_out_p, mxu_dtype)
        arrays["w1"] = jnp.concatenate([w1, wp], axis=1)       # fused RHS
        b1 = pad2(params["b1"], 1, hid_p)
        bp = pad2(params["bp"], 1, f_out_p)
        arrays["b1"] = jnp.concatenate([b1, bp], axis=1)        # fused bias
    if use_layer_norm:
        arrays["g1"] = pad2(params["g1"], 1, hid_p)
        arrays["be1"] = pad2(params["be1"], 1, hid_p)
    arrays["w2"] = pad2(params["w2"], hid_p, f_out_p, mxu_dtype)
    arrays["b2"] = pad2(params["b2"], 1, f_out_p)
    if use_layer_norm:
        arrays["g2"] = pad2(params["g2"], 1, f_out_p)
        arrays["be2"] = pad2(params["be2"], 1, f_out_p)

    meta = dict(f_in=f_in, hid=hid, f_out=f_out,
                f_in_p=f_in_p, hid_p=hid_p, f_out_p=f_out_p,
                same_dim=bool(same_dim), use_layer_norm=bool(use_layer_norm),
                mxu_dtype_name=jnp.dtype(mxu_dtype).name)
    return {"arrays": arrays, "meta": meta}


@functools.partial(
    jax.jit,
    static_argnames=("f_in", "hid", "f_out", "f_in_p", "hid_p", "f_out_p",
                     "same_dim", "use_layer_norm", "mxu_dtype_name",
                     "batch_tile"))
def _residual_block_impl(x, arrays, *, f_in, hid, f_out, f_in_p, hid_p, f_out_p,
                         same_dim, use_layer_norm, mxu_dtype_name, batch_tile):
    B = x.shape[0]
    mxu_dtype = jnp.dtype(mxu_dtype_name)

    # Balanced batch tiling: minimise padding waste (<1 sublane group per tile)
    # and ensure >=2 grid steps when B > 8 so the "parallel" batch axis can be
    # sharded across v7x's two TensorCores.
    n_tiles = max(1, _cdiv(B, batch_tile))
    if n_tiles == 1 and B > SUBLANE:
        n_tiles = 2
    tb = _round_up(_cdiv(B, n_tiles), SUBLANE)
    grid_n = _cdiv(B, tb)
    b_p = grid_n * tb

    x_p = jnp.pad(x, ((0, b_p - B), (0, f_in_p - f_in)))

    names = ["w1", "b1"]
    if use_layer_norm:
        names += ["g1", "be1"]
    names += ["w2", "b2"]
    if use_layer_norm:
        names += ["g2", "be2"]
    param_args = [arrays[n] for n in names]

    # x / out are pipelined in (tb, F) tiles; parameters use constant
    # index_maps (single-buffered when supported) so they stay VMEM-resident.
    in_specs = [pl.BlockSpec((tb, f_in_p), lambda i: (i, 0))]
    in_specs += [_const_spec(a.shape) for a in param_args]

    # TODO(synk): add a feature-tiled fallback (extra "arbitrary" K/N grid axis
    # + f32 VMEM accumulator) for widths whose weights do not fit VMEM-resident.

    kernel = _make_kernel(hid, f_out, hid_p, f_out_p, same_dim,
                          use_layer_norm, mxu_dtype)

    flops = 2 * b_p * (f_in_p * (hid_p + (0 if same_dim else f_out_p))
                       + hid_p * f_out_p)
    transcendentals = 2 * b_p if use_layer_norm else 0
    bytes_accessed = int(
        x_p.size * x_p.dtype.itemsize
        + sum(int(a.size) * a.dtype.itemsize for a in param_args)
        + b_p * f_out_p * jnp.dtype(x.dtype).itemsize)

    out_p = pl.pallas_call(
        kernel,
        out_shape=jax.ShapeDtypeStruct((b_p, f_out_p), x.dtype),
        grid=(grid_n,),
        in_specs=in_specs,
        out_specs=pl.BlockSpec((tb, f_out_p), lambda i: (i, 0)),
        compiler_params=pltpu.CompilerParams(
            dimension_semantics=("parallel",),         # megacore on v7x
            vmem_limit_bytes=_vmem_limit_bytes(),      # generation-aware budget
        ),
        cost_estimate=pl.CostEstimate(
            flops=flops, transcendentals=transcendentals,
            bytes_accessed=bytes_accessed),
    )(x_p, *param_args)

    return out_p[:B, :f_out]


def residual_block(x, prepared, batch_tile=256):
    """x: [B, in_features] -> [B, out_features], matching the PyTorch forward."""
    _buffered_one_supported()        # warm the probe cache outside any trace
    meta = prepared["meta"]
    return _residual_block_impl(x, prepared["arrays"], batch_tile=batch_tile,
                                **meta)


def init_residual_block_params(key, in_features, hidden_features=None,
                               out_features=None):
    """Deterministic params matching PyTorch ResidualBlock.__init__ shapes
    (weights pre-transposed to [in, out])."""
    hidden_features = hidden_features or in_features
    out_features = out_features or in_features
    same_dim = in_features == out_features

    def linear_init(k, fan_in, fan_out):
        kw, kb = jax.random.split(k)
        bound = 1.0 / (fan_in ** 0.5)
        w = jax.random.uniform(kw, (fan_in, fan_out), jnp.float32, -bound, bound)
        b = jax.random.uniform(kb, (1, fan_out), jnp.float32, -bound, bound)
        return w, b

    k1, k2, k3 = jax.random.split(key, 3)
    w1, b1 = linear_init(k1, in_features, hidden_features)
    w2, b2 = linear_init(k2, hidden_features, out_features)
    params = {
        "w1": w1, "b1": b1,
        "g1": jnp.ones((1, hidden_features), jnp.float32),
        "be1": jnp.zeros((1, hidden_features), jnp.float32),
        "w2": w2, "b2": b2,
        "g2": jnp.ones((1, out_features), jnp.float32),
        "be2": jnp.zeros((1, out_features), jnp.float32),
    }
    if not same_dim:
        wp, bp = linear_init(k3, in_features, out_features)
        params["wp"] = wp
        params["bp"] = bp
    return params, same_dim


def _reference(x, params, same_dim, use_layer_norm=True):
    # Pure-JAX f32 reference mirroring the PyTorch forward.
    def ln(h, g, b):
        m = jnp.mean(h, axis=-1, keepdims=True)
        v = jnp.mean((h - m) ** 2, axis=-1, keepdims=True)
        return (h - m) / jnp.sqrt(v + LN_EPS) * g + b

    h = x @ params["w1"] + params["b1"]
    if use_layer_norm:
        h = ln(h, params["g1"], params["be1"])
    h = jnp.maximum(h, 0.0)
    y = h @ params["w2"] + params["b2"]
    if use_layer_norm:
        y = ln(y, params["g2"], params["be2"])
    ident = x if same_dim else x @ params["wp"] + params["bp"]
    return jnp.maximum(y + ident, 0.0)


if __name__ == "__main__":
    key = jax.random.PRNGKey(0)
    kx, kx3, kp1, kp2 = jax.random.split(key, 4)

    B, IN, HID = 8, 32, 64
    x = jax.random.normal(kx, (B, IN), jnp.float32)

    # Case 1: identity skip (out == in), explicit f32 MXU path -> tight tolerance.
    params1, same1 = init_residual_block_params(kp1, IN, HID, IN)
    prep1_f32 = prepare_params(params1, same1, mxu_dtype=jnp.float32)
    out1 = jax.block_until_ready(residual_block(x, prep1_f32))
    ref1 = _reference(x, params1, same1)
    assert out1.shape == (B, IN)
    assert jnp.allclose(out1, ref1, atol=2e-4, rtol=2e-4)

    # Case 2: projection skip (out != in; w1||wp fused RHS), f32 MXU path.
    OUT = 48
    params2, same2 = init_residual_block_params(kp2, IN, HID, OUT)
    prep2_f32 = prepare_params(params2, same2, mxu_dtype=jnp.float32)
    out2 = jax.block_until_ready(residual_block(x, prep2_f32))
    ref2 = _reference(x, params2, same2)
    assert out2.shape == (B, OUT)
    assert jnp.allclose(out2, ref2, atol=2e-4, rtol=2e-4)

    # Case 3: multi-tile batch (balanced tiles, >=2 grid steps) + default bf16 MXU.
    B3 = 300
    x3 = jax.random.normal(kx3, (B3, IN), jnp.float32)
    prep1_bf16 = prepare_params(params1, same1)            # bf16 is the default
    out3 = jax.block_until_ready(residual_block(x3, prep1_bf16))
    ref3 = _reference(x3, params1, same1)
    assert out3.shape == (B3, IN)
    assert float(jnp.max(jnp.abs(out3 - ref3))) < 0.1      # bf16 MXU tolerance

    # Case 4: use_layer_norm=False, projection skip, f32 MXU path.
    prep2_noln = prepare_params(params2, same2, use_layer_norm=False,
                                mxu_dtype=jnp.float32)
    out4 = jax.block_until_ready(residual_block(x, prep2_noln))
    ref4 = _reference(x, params2, same2, use_layer_norm=False)
    assert out4.shape == (B, OUT)
    assert jnp.allclose(out4, ref4, atol=2e-4, rtol=2e-4)

    print("KERNEL_OK")
</pallas_src>

<mosaic_0001>
module attributes {stable_mosaic.version = 11 : i64} {
  func.func @_copy(%arg0: i32, %arg1: memref<8x128xf32, #tpu.memory_space<vmem>>, %arg2: memref<8x128xf32, #tpu.memory_space<vmem>>) attributes {dimension_semantics = [#tpu.dimension_semantics<arbitrary>], iteration_bounds = array<i64: 1>, scalar_prefetch = 0 : i64, scratch_operands = 0 : i64, tpu.core_type = #tpu.core_type<tc>, window_params = [{pipeline_mode = #tpu.pipeline_mode<synchronous>, transform_indices = @transform_0, window_bounds = array<i64: 8, 128>}, {pipeline_mode = #tpu.pipeline_mode<synchronous>, transform_indices = @transform_1, window_bounds = array<i64: 8, 128>}]} {
    %c0 = arith.constant 0 : index
    %c0_0 = arith.constant 0 : index
    %0 = vector.load %arg1[%c0, %c0_0] : memref<8x128xf32, #tpu.memory_space<vmem>>, vector<8x128xf32>
    %c0_1 = arith.constant 0 : index
    %c0_2 = arith.constant 0 : index
    %1 = vector.load %arg2[%c0_1, %c0_2] : memref<8x128xf32, #tpu.memory_space<vmem>>, vector<8x128xf32>
    tpu.vector_store %arg2[%c0_1, %c0_2], %0 {strides = array<i32>} : memref<8x128xf32, #tpu.memory_space<vmem>>, vector<8x128xf32>,
    return
  }
  func.func @transform_0(%arg0: i32) -> (i32, i32) {
    %c0_i32 = arith.constant 0 : i32
    %c0_i32_0 = arith.constant 0 : i32
    %c0_i32_1 = arith.constant 0 : i32
    return %c0_i32, %c0_i32_0 : i32, i32
  }
  func.func @transform_1(%arg0: i32) -> (i32, i32) {
    %c0_i32 = arith.constant 0 : i32
    %c0_i32_0 = arith.constant 0 : i32
    %c0_i32_1 = arith.constant 0 : i32
    return %c0_i32, %c0_i32_0 : i32, i32
  }
}

module attributes {stable_mosaic.version = 11 : i64} {
  func.func @kernel(%arg0: i32, %arg1: memref<8x128xf32, #tpu.memory_space<vmem>>, %arg2: memref<128x128xf32, #tpu.memory_space<vmem>>, %arg3: memref<1x128xf32, #tpu.memory_space<vmem>>, %arg4: memref<1x128xf32, #tpu.memory_space<vmem>>, %arg5: memref<1x128xf32, #tpu.memory_space<vmem>>, %arg6: memref<128x128xf32, #tpu.memory_space<vmem>>, %arg7: memref<1x128xf32, #tpu.memory_space<vmem>>, %arg8: memref<1x128xf32, #tpu.memory_space<vmem>>, %arg9: memref<1x128xf32, #tpu.memory_space<vmem>>, %arg10: memref<8x128xf32, #tpu.memory_space<vmem>>) attributes {dimension_semantics = [#tpu.dimension_semantics<parallel>], iteration_bounds = array<i64: 1>, scalar_prefetch = 0 : i64, scratch_operands = 0 : i64, tpu.core_type = #tpu.core_type<tc>, window_params = [{transform_indices = @transform_0, window_bounds = array<i64: 8, 128>}, {pipeline_mode = #tpu.pipeline_mode<synchronous>, transform_indices = @transform_1, window_bounds = array<i64: 128, 128>}, {pipeline_mode = #tpu.pipeline_mode<synchronous>, transform_indices = @transform_2, window_bounds = array<i64: 1, 128>}, {pipeline_mode = #tpu.pipeline_mode<synchronous>, transform_indices = @transform_3, window_bounds = array<i64: 1, 128>}, {pipeline_mode = #tpu.pipeline_mode<synchronous>, transform_indices = @transform_4, window_bounds = array<i64: 1, 128>}, {pipeline_mode = #tpu.pipeline_mode<synchronous>, transform_indices = @transform_5, window_bounds = array<i64: 128, 128>}, {pipeline_mode = #tpu.pipeline_mode<synchronous>, transform_indices = @transform_6, window_bounds = array<i64: 1, 128>}, {pipeline_mode = #tpu.pipeline_mode<synchronous>, transform_indices = @transform_7, window_bounds = array<i64: 1, 128>}, {pipeline_mode = #tpu.pipeline_mode<synchronous>, transform_indices = @transform_8, window_bounds = array<i64: 1, 128>}, {transform_indices = @transform_9, window_bounds = array<i64: 8, 128>}]} {
    %c0 = arith.constant 0 : index
    %c0_0 = arith.constant 0 : index
    %0 = vector.load %arg1[%c0, %c0_0] : memref<8x128xf32, #tpu.memory_space<vmem>>, vector<8x128xf32>
    %c0_1 = arith.constant 0 : index
    %c0_2 = arith.constant 0 : index
    %1 = vector.load %arg2[%c0_1, %c0_2] : memref<128x128xf32, #tpu.memory_space<vmem>>, vector<128x128xf32>
    %cst = arith.constant dense<0.000000e+00> : vector<8x128xf32>
    %2 = tpu.matmul %0, %1, %cst {dimension_numbers = #tpu.dot_dimension_numbers<[1], [0], [0], [1], [0, 0, 1, 1], [], []>} : vector<8x128xf32>, vector<128x128xf32>, vector<8x128xf32> -> vector<8x128xf32>
    %c0_3 = arith.constant 0 : index
    %c0_4 = arith.constant 0 : index
    %3 = vector.load %arg3[%c0_3, %c0_4] : memref<1x128xf32, #tpu.memory_space<vmem>>, vector<1x128xf32>
    %4 = vector.broadcast %3 : vector<1x128xf32> to vector<8x128xf32>
    %5 = arith.addf %2, %4 : vector<8x128xf32>
    %c0_5 = arith.constant 0 : index
    %c0_6 = arith.constant 0 : index
    %6 = vector.load %arg4[%c0_5, %c0_6] : memref<1x128xf32, #tpu.memory_space<vmem>>, vector<1x128xf32>
    %c0_7 = arith.constant 0 : index
    %c0_8 = arith.constant 0 : index
    %7 = vector.load %arg5[%c0_7, %c0_8] : memref<1x128xf32, #tpu.memory_space<vmem>>, vector<1x128xf32>
    %cst_9 = arith.constant dense<0.000000e+00> : vector<8xf32>
    %8 = vector.multi_reduction <add>, %5, %cst_9 [1] : vector<8x128xf32> to vector<8xf32>
    %9 = vector.shape_cast %8 : vector<8xf32> to vector<8x1xf32>
    %cst_10 = arith.constant 1.562500e-02 : f32
    %10 = vector.broadcast %cst_10 : f32 to vector<8x1xf32>
    %11 = arith.mulf %9, %10 : vector<8x1xf32>
    %12 = vector.broadcast %11 : vector<8x1xf32> to vector<8x128xf32>
    %13 = arith.subf %5, %12 : vector<8x128xf32>
    %14 = tpu.iota {dimensions = array<i32: 1>} : vector<8x128xi32>
    %c64_i32 = arith.constant 64 : i32
    %15 = vector.broadcast %c64_i32 : i32 to vector<8x128xi32>
    %16 = arith.cmpi slt, %14, %15 : vector<8x128xi32>
    %cst_11 = arith.constant 0.000000e+00 : f32
    %17 = vector.broadcast %cst_11 : f32 to vector<8x128xf32>
    %18 = arith.select %16, %13, %17 : vector<8x128xi1>, vector<8x128xf32>
    %19 = arith.mulf %18, %18 : vector<8x128xf32>
    %cst_12 = arith.constant dense<0.000000e+00> : vector<8xf32>
    %20 = vector.multi_reduction <add>, %19, %cst_12 [1] : vector<8x128xf32> to vector<8xf32>
    %21 = vector.shape_cast %20 : vector<8xf32> to vector<8x1xf32>
    %cst_13 = arith.constant 1.562500e-02 : f32
    %22 = vector.broadcast %cst_13 : f32 to vector<8x1xf32>
    %23 = arith.mulf %21, %22 : vector<8x1xf32>
    %cst_14 = arith.constant 9.99999974E-6 : f32
    %24 = vector.broadcast %cst_14 : f32 to vector<8x1xf32>
    %25 = arith.addf %23, %24 : vector<8x1xf32>
    %26 = math.rsqrt %25 : vector<8x1xf32>
    %27 = vector.broadcast %26 : vector<8x1xf32> to vector<8x128xf32>
    %28 = arith.mulf %18, %27 : vector<8x128xf32>
    %29 = vector.broadcast %6 : vector<1x128xf32> to vector<8x128xf32>
    %30 = arith.mulf %28, %29 : vector<8x128xf32>
    %31 = vector.broadcast %7 : vector<1x128xf32> to vector<8x128xf32>
    %32 = arith.addf %30, %31 : vector<8x128xf32>
    %cst_15 = arith.constant 0.000000e+00 : f32
    %33 = vector.broadcast %cst_15 : f32 to vector<8x128xf32>
    %34 = arith.maximumf %32, %33 : vector<8x128xf32>
    %c0_16 = arith.constant 0 : index
    %c0_17 = arith.constant 0 : index
    %35 = vector.load %arg6[%c0_16, %c0_17] : memref<128x128xf32, #tpu.memory_space<vmem>>, vector<128x128xf32>
    %cst_18 = arith.constant dense<0.000000e+00> : vector<8x128xf32>
    %36 = tpu.matmul %34, %35, %cst_18 {dimension_numbers = #tpu.dot_dimension_numbers<[1], [0], [0], [1], [0, 0, 1, 1], [], []>} : vector<8x128xf32>, vector<128x128xf32>, vector<8x128xf32> -> vector<8x128xf32>
    %c0_19 = arith.constant 0 : index
    %c0_20 = arith.constant 0 : index
    %37 = vector.load %arg7[%c0_19, %c0_20] : memref<1x128xf32, #tpu.memory_space<vmem>>, vector<1x128xf32>
    %38 = vector.broadcast %37 : vector<1x128xf32> to vector<8x128xf32>
    %39 = arith.addf %36, %38 : vector<8x128xf32>
    %c0_21 = arith.constant 0 : index
    %c0_22 = arith.constant 0 : index
    %40 = vector.load %arg8[%c0_21, %c0_22] : memref<1x128xf32, #tpu.memory_space<vmem>>, vector<1x128xf32>
    %c0_23 = arith.constant 0 : index
    %c0_24 = arith.constant 0 : index
    %41 = vector.load %arg9[%c0_23, %c0_24] : memref<1x128xf32, #tpu.memory_space<vmem>>, vector<1x128xf32>
    %cst_25 = arith.constant dense<0.000000e+00> : vector<8xf32>
    %42 = vector.multi_reduction <add>, %39, %cst_25 [1] : vector<8x128xf32> to vector<8xf32>
    %43 = vector.shape_cast %42 : vector<8xf32> to vector<8x1xf32>
    %cst_26 = arith.constant 3.125000e-02 : f32
    %44 = vector.broadcast %cst_26 : f32 to vector<8x1xf32>
    %45 = arith.mulf %43, %44 : vector<8x1xf32>
    %46 = vector.broadcast %45 : vector<8x1xf32> to vector<8x128xf32>
    %47 = arith.subf %39, %46 : vector<8x128xf32>
    %48 = tpu.iota {dimensions = array<i32: 1>} : vector<8x128xi32>
    %c32_i32 = arith.constant 32 : i32
    %49 = vector.broadcast %c32_i32 : i32 to vector<8x128xi32>
    %50 = arith.cmpi slt, %48, %49 : vector<8x128xi32>
    %cst_27 = arith.constant 0.000000e+00 : f32
    %51 = vector.broadcast %cst_27 : f32 to vector<8x128xf32>
    %52 = arith.select %50, %47, %51 : vector<8x128xi1>, vector<8x128xf32>
    %53 = arith.mulf %52, %52 : vector<8x128xf32>
    %cst_28 = arith.constant dense<0.000000e+00> : vector<8xf32>
    %54 = vector.multi_reduction <add>, %53, %cst_28 [1] : vector<8x128xf32> to vector<8xf32>
    %55 = vector.shape_cast %54 : vector<8xf32> to vector<8x1xf32>
    %cst_29 = arith.constant 3.125000e-02 : f32
    %56 = vector.broadcast %cst_29 : f32 to vector<8x1xf32>
    %57 = arith.mulf %55, %56 : vector<8x1xf32>
    %cst_30 = arith.constant 9.99999974E-6 : f32
    %58 = vector.broadcast %cst_30 : f32 to vector<8x1xf32>
    %59 = arith.addf %57, %58 : vector<8x1xf32>
    %60 = math.rsqrt %59 : vector<8x1xf32>
    %61 = vector.broadcast %60 : vector<8x1xf32> to vector<8x128xf32>
    %62 = arith.mulf %52, %61 : vector<8x128xf32>
    %63 = vector.broadcast %40 : vector<1x128xf32> to vector<8x128xf32>
    %64 = arith.mulf %62, %63 : vector<8x128xf32>
    %65 = vector.broadcast %41 : vector<1x128xf32> to vector<8x128xf32>
    %66 = arith.addf %64, %65 : vector<8x128xf32>
    %67 = arith.addf %66, %0 : vector<8x128xf32>
    %cst_31 = arith.constant 0.000000e+00 : f32
    %68 = vector.broadcast %cst_31 : f32 to vector<8x128xf32>
    %69 = arith.maximumf %67, %68 : vector<8x128xf32>
    %c0_32 = arith.constant 0 : index
    %c0_33 = arith.constant 0 : index
    %70 = vector.load %arg10[%c0_32, %c0_33] : memref<8x128xf32, #tpu.memory_space<vmem>>, vector<8x128xf32>
    tpu.vector_store %arg10[%c0_32, %c0_33], %69 {strides = array<i32>} : memref<8x128xf32, #tpu.memory_space<vmem>>, vector<8x128xf32>,
    return
  }
  func.func @transform_0(%arg0: i32) -> (i32, i32) {
    %c0_i32 = arith.constant 0 : i32
    %c0_i32_0 = arith.constant 0 : i32
    return %arg0, %c0_i32 : i32, i32
  }
  func.func @transform_1(%arg0: i32) -> (i32, i32) {
    %c0_i32 = arith.constant 0 : i32
    %c0_i32_0 = arith.constant 0 : i32
    %c0_i32_1 = arith.constant 0 : i32
    return %c0_i32, %c0_i32_0 : i32, i32
  }
  func.func @transform_2(%arg0: i32) -> (i32, i32) {
    %c0_i32 = arith.constant 0 : i32
    %c0_i32_0 = arith.constant 0 : i32
    %c0_i32_1 = arith.constant 0 : i32
    return %c0_i32, %c0_i32_0 : i32, i32
  }
  func.func @transform_3(%arg0: i32) -> (i32, i32) {
    %c0_i32 = arith.constant 0 : i32
    %c0_i32_0 = arith.constant 0 : i32
    %c0_i32_1 = arith.constant 0 : i32
    return %c0_i32, %c0_i32_0 : i32, i32
  }
  func.func @transform_4(%arg0: i32) -> (i32, i32) {
    %c0_i32 = arith.constant 0 : i32
    %c0_i32_0 = arith.constant 0 : i32
    %c0_i32_1 = arith.constant 0 : i32
    return %c0_i32, %c0_i32_0 : i32, i32
  }
  func.func @transform_5(%arg0: i32) -> (i32, i32) {
    %c0_i32 = arith.constant 0 : i32
    %c0_i32_0 = arith.constant 0 : i32
    %c0_i32_1 = arith.constant 0 : i32
    return %c0_i32, %c0_i32_0 : i32, i32
  }
  func.func @transform_6(%arg0: i32) -> (i32, i32) {
    %c0_i32 = arith.constant 0 : i32
    %c0_i32_0 = arith.constant 0 : i32
    %c0_i32_1 = arith.constant 0 : i32
    return %c0_i32, %c0_i32_0 : i32, i32
  }
  func.func @transform_7(%arg0: i32) -> (i32, i32) {
    %c0_i32 = arith.constant 0 : i32
    %c0_i32_0 = arith.constant 0 : i32
    %c0_i32_1 = arith.constant 0 : i32
    return %c0_i32, %c0_i32_0 : i32, i32
  }
  func.func @transform_8(%arg0: i32) -> (i32, i32) {
    %c0_i32 = arith.constant 0 : i32
    %c0_i32_0 = arith.constant 0 : i32
    %c0_i32_1 = arith.constant 0 : i32
    return %c0_i32, %c0_i32_0 : i32, i32
  }
  func.func @transform_9(%arg0: i32) -> (i32, i32) {
    %c0_i32 = arith.constant 0 : i32
    %c0_i32_0 = arith.constant 0 : i32
    return %arg0, %c0_i32 : i32, i32
  }
}

</mosaic_0001>

<bundles_post_ra>
// kernel: tpu_custom_call.1
= control target key start
LH: loop header
LB: loop body
LE: loop exit
PB: predicated region body
PF: predicated region fallthrough
CT: control target
= control target key end

     0   :  { %6 = vsyncpa [#allocation3], 0  ;;  %s124_s0 = inlined_call_operand.hbm [shape: f32[8,128], index: 0, kind: input, shape index: {}]   ;;  %s125_s1 = inlined_call_operand.hbm [shape: f32[8,128], index: 1, kind: output, shape index: {}]  }
   0x1   :  { %7 = vsyncpa [#allocation4], 0  ;;  %s88_s6 = smov [#allocation2]   ;;  %s40_s10 = scalar_lea.hbm %s124_s0, 128 }
   0x2   :  { %s14_s7 = sshll.u32 %s88_s6, 4  ;;  %p41_p0 = scmp.ne.s32.totalorder %s124_s0, %s40_s10  ;;  %s15_s7 = int_to_ptr.vmem [resolvable:$true] %s14_s7 }
   0x3   :  { %p44_p1 = scmp.lt.u32.totalorder %s40_s10, %s124_s0 }
   0x5   :  { %p46_p2 = pnand %p44_p1, %p41_p0 }
   0x7   :  { %49 = shalt.err (!%p46_p2)
}
   0x8   :  { %s50_s15 = scalar_lea.vmem %s15_s7, 128  ;;  %p55_p4 = scmp.lt.s32.totalorder %s15_s7, %s15_s7 }
   0x9   :  { %p51_p3 = scmp.ne.s32.totalorder %s15_s7, %s50_s15  ;;  %p56_p5 = scmp.lt.s32.totalorder %s50_s15, %s50_s15 }
   0xb   :  { %p57_p6 = por %p56_p5, %p55_p4 }
   0xd   :  { %p58_p7 = pnand %p57_p6, %p51_p3 }
   0xf   :  { %61 = shalt.err (!%p58_p7)
}
  0x10   :  { %17 = dma.hbm_to_vmem [thread:$0]  %s124_s0, 128, %s15_s7, [#allocation3]  }
  0x11   :  { %84 = dma.done.wait [#allocation3], 128  }
  0x12   :  { %85 = vsyncadd [#allocation3], 4294967168  ;;  %s89_s18 = smov [#allocation5]   ;;  %v21_v0 = vld [vmem:[#allocation2] sm:$0xff] }
  0x13   :  { %s29_s19 = sshll.u32 %s89_s18, 4  ;;  %22 = vst [vmem:[#allocation5] sm:$0xff] %v21_v0  ;;  %s30_s19 = int_to_ptr.vmem [resolvable:$true] %s29_s19 }
  0x14   :  { %s62_s20 = scalar_lea.vmem %s30_s19, 128  ;;  %p67_p9 = scmp.lt.s32.totalorder %s30_s19, %s30_s19 }
  0x15   :  { %p63_p8 = scmp.ne.s32.totalorder %s30_s19, %s62_s20  ;;  %p68_p10 = scmp.lt.s32.totalorder %s62_s20, %s62_s20 }
  0x17   :  { %p69_p11 = por %p68_p10, %p67_p9 }
  0x19   :  { %p70_p12 = pnand %p69_p11, %p63_p8 }
  0x1b   :  { %73 = shalt.err (!%p70_p12)
}
  0x1c   :  { %s74_s23 = scalar_lea.hbm %s125_s1, 128 }
  0x1d   :  { %p75_p13 = scmp.ne.s32.totalorder %s125_s1, %s74_s23  ;;  %p78_p0 = scmp.lt.u32.totalorder %s74_s23, %s125_s1 }
  0x1f   :  { %p80_p1 = pnand %p78_p0, %p75_p13 }
  0x21   :  { %83 = shalt.err (!%p80_p1)
}
  0x22   :  { %32 = dma.vmem_to_hbm [thread:$0]  %s30_s19, 128, %s125_s1, [#allocation4]  }
  0x23   :  { %86 = dma.done.wait [#allocation4], 128  }
  0x24   :  { %87 = vsyncadd [#allocation4], 4294967168 }
  0x25   :  { %36 = vsyncpa [#allocation3], 1 }
  0x26   :  { %37 = vsyncpa [#allocation4], 1 }

// kernel: _residual_block_impl.1
= control target key start
LH: loop header
LB: loop body
LE: loop exit
PB: predicated region body
PF: predicated region fallthrough
CT: control target
= control target key end

     0   :  { %14 = vsyncpa [#allocation3], 0  ;;  %s705_s0 = inlined_call_operand.vmem [shape: f32[8,128], index: 0, kind: input, shape index: {}]   ;;  %s706_s1 = inlined_call_operand.hbm [shape: f32[128,128], index: 1, kind: input, shape index: {}]   ;;  %s707_s2 = inlined_call_operand.vmem [shape: f32[1,128], index: 2, kind: input, shape index: {}]   ;;  %s708_s3 = inlined_call_operand.vmem [shape: f32[1,128], index: 3, kind: input, shape index: {}]   ;;  %s709_s4 = inlined_call_operand.vmem [shape: f32[1,128], index: 4, kind: input, shape index: {}]   ;;  %s710_s5 = inlined_call_operand.hbm [shape: f32[128,128], index: 5, kind: input, shape index: {}]   ;;  %s711_s6 = inlined_call_operand.vmem [shape: f32[1,128], index: 6, kind: input, shape index: {}]   ;;  %s712_s7 = inlined_call_operand.vmem [shape: f32[1,128], index: 7, kind: input, shape index: {}]   ;;  %s713_s8 = inlined_call_operand.vmem [shape: f32[1,128], index: 8, kind: input, shape index: {}]   ;;  %s714_s9 = inlined_call_operand.hbm [shape: f32[8,128], index: 9, kind: output, shape index: {}]  }
   0x1   :  { %15 = vsyncpa [#allocation6], 0 }
   0x2   :  { %16 = vsyncpa [#allocation4], 0  ;;  %s570_s30 = smov [#allocation2]   ;;  %s498_s13 = scalar_lea.hbm %s706_s1, 2048 }
   0x3   :  { %s24_s10 = sshll.u32 %s570_s30, 4  ;;  %p499_p0 = scmp.ne.s32.totalorder %s706_s1, %s498_s13  ;;  %s25_s10 = int_to_ptr.vmem [resolvable:$true] %s24_s10 }
   0x4   :  { %p502_p1 = scmp.lt.u32.totalorder %s498_s13, %s706_s1 }
   0x6   :  { %p504_p2 = pnand %p502_p1, %p499_p0 }
   0x8   :  { %507 = shalt.err (!%p504_p2)
}
   0x9   :  { %s508_s18 = scalar_lea.vmem %s25_s10, 2048  ;;  %p513_p4 = scmp.lt.s32.totalorder %s25_s10, %s25_s10 }
   0xa   :  { %p509_p3 = scmp.ne.s32.totalorder %s25_s10, %s508_s18  ;;  %p514_p5 = scmp.lt.s32.totalorder %s508_s18, %s508_s18 }
   0xc   :  { %p515_p6 = por %p514_p5, %p513_p4 }
   0xe   :  { %p516_p7 = pnand %p515_p6, %p509_p3 }
  0x10   :  { %519 = shalt.err (!%p516_p7)
}
  0x11   :  { %s571_s19 = smov 128   ;;  %s572_s20 = smov 8  }
  0x12   :  { %30 = dma.hbm_to_vmem [thread:$0]  %s706_s1, 2048, %s25_s10, [#allocation3], %s571_s19, %s571_s19, %s572_s20  }
  0x13   :  { %s573_s23 = smov [#allocation5]   ;;  %s520_s27 = scalar_lea.hbm %s710_s5, 2048 }
  0x14   :  { %s42_s24 = sshll.u32 %s573_s23, 4  ;;  %p521_p8 = scmp.ne.s32.totalorder %s710_s5, %s520_s27  ;;  %s43_s24 = int_to_ptr.vmem [resolvable:$true] %s42_s24 }
  0x15   :  { %p524_p9 = scmp.lt.u32.totalorder %s520_s27, %s710_s5 }
  0x17   :  { %p526_p10 = pnand %p524_p9, %p521_p8 }
  0x19   :  { %529 = shalt.err (!%p526_p10)
}
  0x1a   :  { %s530_s12 = scalar_lea.vmem %s43_s24, 2048  ;;  %p535_p12 = scmp.lt.s32.totalorder %s43_s24, %s43_s24 }
  0x1b   :  { %p531_p11 = scmp.ne.s32.totalorder %s43_s24, %s530_s12  ;;  %p536_p13 = scmp.lt.s32.totalorder %s530_s12, %s530_s12 }
  0x1d   :  { %p537_p0 = por %p536_p13, %p535_p12 }
  0x1f   :  { %p538_p1 = pnand %p537_p0, %p531_p11 }
  0x21   :  { %541 = shalt.err (!%p538_p1)
}
  0x22   :  { %48 = dma.hbm_to_vmem [thread:$0]  %s710_s5, 2048, %s43_s24, [#allocation6], %s571_s19, %s571_s19, %s572_s20  }
  0x23   :  { %564 = dma.done.wait [#allocation3], 2048  }
  0x24   :  { %565 = vsyncadd [#allocation3], 4294965248 }
  0x25   :  { %566 = dma.done.wait [#allocation6], 2048  }
  0x26   :  { %567 = vsyncadd [#allocation6], 4294965248  ;;  %v574_v0 = vmov 0.0|0.0   ;;  %vm575_vm0 = vmmov 0   ;;  %v576_v1 = vmov 0.0   ;;  %v62_v2 = vld [vmem:[#allocation2] sm:$0xff]  ;;  %v161_v37 = vlaneseq }
  0x27   :  { %438 = vmatprep.subr.bf16.mxu0 %v574_v0  ;;  %400 = vmatprep.mubr.msk.f32.mxu0 %vm575_vm0, %v576_v1  ;;  %v63_v3 = vld [vmem:[#allocation2 + $0x8] sm:$0xff]  ;;  %v64_v4 = vld [vmem:[#allocation2 + $0x10] sm:$0xff]  ;;  %v65_v6 = vld [vmem:[#allocation2 + $0x18] sm:$0xff]  ;;  %s577_s21 = smov [#allocation7]  }
  0x28   :  { %462 = vmatprep.subr.bf16.mxu1 %v574_v0  ;;  %435 = vmatprep.mubr.msk.f32.mxu1 %vm575_vm0, %v576_v1  ;;  %v439_v5 = vpack.c.bf16 %v63_v3, %v62_v2  ;;  %v442_v7 = vpack.c.bf16 %v65_v6, %v64_v4  ;;  %v66_v8 = vld [vmem:[#allocation2 + $0x20] sm:$0xff]  ;;  %v67_v9 = vld [vmem:[#allocation2 + $0x28] sm:$0xff]  ;;  %v68_v11 = vld [vmem:[#allocation2 + $0x30] sm:$0xff]  ;;  %v162_v38 = vand.u32 127, %v161_v37  ;;  %s318_s22 = sshll.u32 %s577_s21, 4  ;;  %s319_s22 = int_to_ptr.vmem [resolvable:$true] %s318_s22 }
  0x29   :  { %v445_v10 = vpack.c.bf16 %v67_v9, %v66_v8  ;;  %v69_v12 = vld [vmem:[#allocation2 + $0x38] sm:$0xff]  ;;  %v70_v14 = vld [vmem:[#allocation2 + $0x40] sm:$0xff]  ;;  %v71_v15 = vld [vmem:[#allocation2 + $0x48] sm:$0xff]  ;;  %s542_s23 = scalar_lea.vmem %s319_s22, 128  ;;  %p547_p3 = scmp.lt.s32.totalorder %s319_s22, %s319_s22 }
  0x2a   :  { %440 = vmatpush3.bf16.msra.mxu0 %v439_v5  ;;  %v448_v13 = vpack.c.bf16 %v69_v12, %v68_v11  ;;  %v451_v16 = vpack.c.bf16 %v71_v15, %v70_v14  ;;  %v72_v17 = vld [vmem:[#allocation2 + $0x50] sm:$0xff]  ;;  %v73_v18 = vld [vmem:[#allocation2 + $0x58] sm:$0xff]  ;;  %v74_v20 = vld [vmem:[#allocation2 + $0x60] sm:$0xff]  ;;  %vm163_vm1 = vcmp.lt.s32.totalorder %v162_v38, 64  ;;  %vm286_vm2 = vcmp.lt.s32.totalorder %v162_v38, 32  ;;  %p543_p2 = scmp.ne.s32.totalorder %s319_s22, %s542_s23  ;;  %p548_p4 = scmp.lt.s32.totalorder %s542_s23, %s542_s23 }
  0x2b   :  { %441 = vmatprep.subr.bf16.mxu0 %v574_v0  ;;  %v454_v19 = vpack.c.bf16 %v73_v18, %v72_v17  ;;  %v75_v21 = vld [vmem:[#allocation2 + $0x68] sm:$0xff]  ;;  %v76_v23 = vld [vmem:[#allocation2 + $0x70] sm:$0xff]  ;;  %v77_v24 = vld [vmem:[#allocation2 + $0x78] sm:$0xff] }
  0x2c   :  { %v457_v22 = vpack.c.bf16 %v75_v21, %v74_v20  ;;  %v460_v25 = vpack.c.bf16 %v77_v24, %v76_v23  ;;  %v664_v26 = vld [vmem:[%s705_s0] sm:$0xff]  ;;  %v188_v32 = vld [vmem:[#allocation5 + $0x8] sm:$0xff]  ;;  %v189_v33 = vld [vmem:[#allocation5 + $0x10] sm:$0xff]  ;;  %p549_p5 = por %p548_p4, %p547_p3 }
  0x2d   :  { %v328_v27 = vld [vmem:[%s707_s2] ss:$0 sm:$0xff]  ;;  %v190_v35 = vld [vmem:[#allocation5 + $0x18] sm:$0xff]  ;;  %v192_v45 = vld [vmem:[#allocation5 + $0x28] sm:$0xff] }
  0x2e   :  { %443 = vmatpush3.bf16.msra.mxu0 %v442_v7  ;;  %v187_v31 = vld [vmem:[#allocation5] sm:$0xff]  ;;  %v466_v36 = vpack.c.bf16 %v190_v35, %v189_v33  ;;  %v193_v47 = vld [vmem:[#allocation5 + $0x30] sm:$0xff]  ;;  %v194_v48 = vld [vmem:[#allocation5 + $0x38] sm:$0xff]  ;;  %p550_p6 = pnand %p549_p5, %p543_p2 }
  0x2f   :  { %444 = vmatprep.subr.bf16.mxu0 %v574_v0  ;;  %v463_v34 = vpack.c.bf16 %v188_v32, %v187_v31  ;;  %v191_v44 = vld [vmem:[#allocation5 + $0x20] sm:$0xff]  ;;  %v472_v49 = vpack.c.bf16 %v194_v48, %v193_v47  ;;  %v196_v51 = vld [vmem:[#allocation5 + $0x48] sm:$0xff]  ;;  %v197_v53 = vld [vmem:[#allocation5 + $0x50] sm:$0xff] }
  0x30   :  { %v469_v46 = vpack.c.bf16 %v192_v45, %v191_v44  ;;  %v195_v50 = vld [vmem:[#allocation5 + $0x40] sm:$0xff]  ;;  %v198_v54 = vld [vmem:[#allocation5 + $0x58] sm:$0xff]  ;;  %v200_v57 = vld [vmem:[#allocation5 + $0x68] sm:$0xff] }
  0x31   :  { %464 = vmatpush3.bf16.msra.mxu1 %v463_v34  ;;  %v475_v52 = vpack.c.bf16 %v196_v51, %v195_v50  ;;  %v478_v55 = vpack.c.bf16 %v198_v54, %v197_v53  ;;  %v199_v56 = vld [vmem:[#allocation5 + $0x60] sm:$0xff]  ;;  %v201_v59 = vld [vmem:[#allocation5 + $0x70] sm:$0xff]  ;;  %v202_v60 = vld [vmem:[#allocation5 + $0x78] sm:$0xff] }
  0x32   :  { %446 = vmatpush3.bf16.msra.mxu0 %v445_v10  ;;  %465 = vmatprep.subr.bf16.mxu1 %v574_v0  ;;  %v481_v58 = vpack.c.bf16 %v200_v57, %v199_v56  ;;  %v484_v61 = vpack.c.bf16 %v202_v60, %v201_v59  ;;  %v329_v3 = vld [vmem:[%s708_s3] ss:$0 sm:$0xff] }
  0x33   :  { %447 = vmatprep.subr.bf16.mxu0 %v574_v0  ;;  %v330_v5 = vld [vmem:[%s709_s4] ss:$0 sm:$0xff] }
  0x34   :  { %v332_v21 = vld [vmem:[%s712_s7] ss:$0 sm:$0xff] }
  0x35   :  { %467 = vmatpush3.bf16.msra.mxu1 %v466_v36  ;;  %v333_v23 = vld [vmem:[%s713_s8] ss:$0 sm:$0xff] }
  0x36   :  { %449 = vmatpush3.bf16.msra.mxu0 %v448_v13  ;;  %468 = vmatprep.subr.bf16.mxu1 %v574_v0 }
  0x37   :  { %450 = vmatprep.subr.bf16.mxu0 %v574_v0 }
  0x39   :  { %470 = vmatpush3.bf16.msra.mxu1 %v469_v46 }
  0x3a   :  { %452 = vmatpush3.bf16.msra.mxu0 %v451_v16  ;;  %471 = vmatprep.subr.bf16.mxu1 %v574_v0 }
  0x3b   :  { %453 = vmatprep.subr.bf16.mxu0 %v574_v0 }
  0x3d   :  { %473 = vmatpush3.bf16.msra.mxu1 %v472_v49 }
  0x3e   :  { %455 = vmatpush3.bf16.msra.mxu0 %v454_v19  ;;  %474 = vmatprep.subr.bf16.mxu1 %v574_v0 }
  0x3f   :  { %456 = vmatprep.subr.bf16.mxu0 %v574_v0 }
  0x41   :  { %476 = vmatpush3.bf16.msra.mxu1 %v475_v52 }
  0x42   :  { %458 = vmatpush3.bf16.msra.mxu0 %v457_v22  ;;  %477 = vmatprep.subr.bf16.mxu1 %v574_v0 }
  0x43   :  { %459 = vmatprep.subr.bf16.mxu0 %v574_v0 }
  0x45   :  { %479 = vmatpush3.bf16.msra.mxu1 %v478_v55 }
  0x46   :  { %461 = vmatpush3.bf16.msra.mxu0 %v460_v25  ;;  %480 = vmatprep.subr.bf16.mxu1 %v574_v0 }
  0x49   :  { %401 = vmatmul.mubr.f32.vlgmr.msra.gmra.mrb[0].mxu0 %v664_v26  ;;  %482 = vmatpush3.bf16.msra.mxu1 %v481_v58 }
  0x4a   :  { %483 = vmatprep.subr.bf16.mxu1 %v574_v0  ;;  %v331_v0 = vld [vmem:[%s711_s6] ss:$0 sm:$0xff] }
  0x4d   :  { %485 = vmatpush3.bf16.msra.mxu1 %v484_v61 }
 0x11c   :  { %v151_v28 = vpop.f32.mrb[0].mxu0 }
 0x11d   :  { %v152_v29 = vadd.f32 %v328_v27, %v151_v28  ;;  %v402_v30 = vpop.f32.mrb[1].mxu0 }
 0x11f   :  { %157 = vadd.xlane.f32.xlu0 %v152_v29 }
 0x1ac   :  { %v158_v39 = vpop.xlane.xlu0 %157 }
 0x1ad   :  { %v159_v40 = vmul.f32 0.015625, %v158_v39 }
 0x1af   :  { %v160_v41 = vsub.f32 %v152_v29, %v159_v40 }
 0x1b1   :  { %v164_v42 = vsel %vm163_vm1, %v160_v41, 0.0 }
 0x1b2   :  { %v165_v43 = vmul.f32 %v164_v42, %v164_v42 }
 0x1b4   :  { %166 = vadd.xlane.f32.xlu0 %v165_v43 }
 0x241   :  { %v167_v62 = vpop.xlane.xlu0 %166 }
 0x242   :  { %v168_v63 = vmul.f32 0.015625, %v167_v62 }
 0x244   :  { %v169_v1 = vadd.f32 1e-05, %v168_v63 }
 0x246   :  { %494 = vrsqrt.f32 %v169_v1 }
 0x250   :  { %v495_v2 = vpop.eup %494 }
 0x251   :  { %v171_v4 = vmul.f32 %v495_v2, %v164_v42 }
 0x253   :  { %v178_v6 = vmul.f32 %v329_v3, %v171_v4 }
 0x255   :  { %v185_v7 = vadd.f32 %v330_v5, %v178_v6 }
 0x257   :  { %v186_v8 = vmax.f32 %v185_v7, 0.0 }
 0x259   :  { %436 = vmatmul.mubr.f32.vlgmr.msra.gmra.mrb[0].mxu1 %v186_v8 }
 0x32c   :  { %v276_v9 = vpop.f32.mrb[0].mxu1 }
 0x32d   :  { %v277_v10 = vadd.f32 %v331_v0, %v276_v9  ;;  %v437_v11 = vpop.f32.mrb[1].mxu1 }
 0x32f   :  { %282 = vadd.xlane.f32.xlu1 %v277_v10 }
 0x3bc   :  { %v283_v12 = vpop.xlane.xlu1 %282 }
 0x3bd   :  { %v284_v13 = vmul.f32 0.03125, %v283_v12 }
 0x3bf   :  { %v285_v14 = vsub.f32 %v277_v10, %v284_v13 }
 0x3c1   :  { %v287_v15 = vsel %vm286_vm2, %v285_v14, 0.0 }
 0x3c2   :  { %v288_v16 = vmul.f32 %v287_v15, %v287_v15 }
 0x3c4   :  { %289 = vadd.xlane.f32.xlu1 %v288_v16 }
 0x451   :  { %v290_v17 = vpop.xlane.xlu1 %289 }
 0x452   :  { %v291_v18 = vmul.f32 0.03125, %v290_v17 }
 0x454   :  { %v292_v19 = vadd.f32 1e-05, %v291_v18 }
 0x456   :  { %496 = vrsqrt.f32 %v292_v19 }
 0x460   :  { %v497_v20 = vpop.eup %496 }
 0x461   :  { %v294_v22 = vmul.f32 %v497_v20, %v287_v15 }
 0x463   :  { %v301_v24 = vmul.f32 %v332_v21, %v294_v22 }
 0x465   :  { %v308_v25 = vadd.f32 %v333_v23, %v301_v24 }
 0x467   :  { %v309_v27 = vadd.f32 %v308_v25, %v664_v26 }
 0x469   :  { %v310_v28 = vmax.f32 %v309_v27, 0.0 }
 0x46b   :  { %311 = vst [vmem:[#allocation7] sm:$0xff] %v310_v28 }
 0x46c   :  { %553 = shalt.err (!%p550_p6)
}
 0x46d   :  { %s554_s8 = scalar_lea.hbm %s714_s9, 128 }
 0x46e   :  { %p555_p7 = scmp.ne.s32.totalorder %s714_s9, %s554_s8  ;;  %p558_p8 = scmp.lt.u32.totalorder %s554_s8, %s714_s9 }
 0x470   :  { %p560_p9 = pnand %p558_p8, %p555_p7 }
 0x472   :  { %563 = shalt.err (!%p560_p9)
}
 0x473   :  { %321 = dma.vmem_to_hbm [thread:$0]  %s319_s22, 128, %s714_s9, [#allocation4]  }
 0x474   :  { %568 = dma.done.wait [#allocation4], 128  }
 0x475   :  { %569 = vsyncadd [#allocation4], 4294967168 }
 0x476   :  { %325 = vsyncpa [#allocation3], 1 }
 0x477   :  { %326 = vsyncpa [#allocation6], 1 }
 0x478   :  { %327 = vsyncpa [#allocation4], 1 }

</bundles_post_ra>
